<compile_context>
chip_gen: v7x
topology: tpu7x:2x2x1
jax: 0.10.0
libtpu: 0.0.40
codegen_flags: <defaults>
</compile_context>

<pallas_src>
import jax
import jax.numpy as jnp
from jax.experimental import pallas as pl
from jax.experimental.pallas import tpu as pltpu


def pos_embed_kernel(x_ref, pe_ref, o_ref):
    # x_ref / o_ref block: (bB, tT, tC); pe_ref block: (tT, tC), shared
    # (broadcast) across the bB batch elements of this grid step.
    pe = pe_ref[...].astype(x_ref.dtype)
    o_ref[...] = (x_ref[...] + pe[None, :, :]).astype(o_ref.dtype)


def make_position_embedding_table(n_embd, block_size, dtype=jnp.float32):
    """Builds the `pe` buffer exactly as the PyTorch __init__ does."""
    pos = jnp.arange(block_size, dtype=jnp.float32)[:, None]                     # (T, 1)
    div_term = jnp.float32(10000.0) ** (
        jnp.arange(0, n_embd, 2, dtype=jnp.float32) / jnp.float32(n_embd)
    )                                                                            # (C//2,)
    vals = jnp.sin(pos / div_term)                                               # (T, C//2)
    pe = jnp.zeros((block_size, n_embd), dtype=jnp.float32)
    pe = pe.at[:, 0::2].set(vals)
    pe = pe.at[:, 1::2].set(vals)   # spec uses sin for BOTH even and odd columns
    return pe.astype(dtype)


def _pick_tiles(B, T, C, dtype_bytes):
    # Lane (last) axis: keep it whole unless it's a large multiple of 512.
    tC = 512 if (C % 512 == 0 and C > 512) else C
    # Sublane axis: keep whole T unless it's a large multiple of 256.
    tT = 256 if (T % 256 == 0 and T > 256) else T
    # Pack batches per grid step (x + out blocks, double-buffered => 4 copies),
    # staying within a modest VMEM budget so it also fits v7x's 64 MiB VMEM.
    budget = 8 * 1024 * 1024
    per_batch = tT * tC * dtype_bytes
    bB = max(1, min(B, budget // max(1, 4 * per_batch)))
    while B % bB != 0:
        bB -= 1
    return bB, tT, tC


def position_embedding_forward(x, pe):
    """x: (B, T, C); pe: (T, C). Returns pe + x, shape (B, T, C)."""
    B, T, C = x.shape
    assert pe.shape == (T, C), (pe.shape, (T, C))

    dtype_bytes = jnp.dtype(x.dtype).itemsize
    bB, tT, tC = _pick_tiles(B, T, C, dtype_bytes)
    grid = (B // bB, T // tT, C // tC)

    cost = pl.CostEstimate(
        flops=B * T * C,                     # one add per element
        transcendentals=0,                   # pe (sin) is precomputed on host
        bytes_accessed=(2 * x.size + pe.size) * dtype_bytes,
    )

    return pl.pallas_call(
        pos_embed_kernel,
        out_shape=jax.ShapeDtypeStruct((B, T, C), x.dtype),
        grid_spec=pltpu.PrefetchScalarGridSpec(
            num_scalar_prefetch=0,
            grid=grid,
            in_specs=[
                pl.BlockSpec((bB, tT, tC), lambda b, i, j: (b, i, j)),   # x
                pl.BlockSpec((tT, tC), lambda b, i, j: (i, j)),          # pe (broadcast over batch)
            ],
            out_specs=pl.BlockSpec((bB, tT, tC), lambda b, i, j: (b, i, j)),
        ),
        compiler_params=pltpu.CompilerParams(
            dimension_semantics=("parallel", "parallel", "parallel"),
        ),
        cost_estimate=cost,
    )(x, pe)


def position_embedding_reference(x, pe):
    """Pure-JAX reference matching the PyTorch forward exactly."""
    return x + pe[None, :, :]


if __name__ == "__main__":
    # block_size (seq) = 8, n_embd = 32, batch = 2
    B, T, C = 2, 8, 32

    key = jax.random.PRNGKey(0)
    x = jax.random.normal(key, (B, T, C), dtype=jnp.float32)

    pe = make_position_embedding_table(n_embd=C, block_size=T)

    out = position_embedding_forward(x, pe)
    out = jax.block_until_ready(out)

    ref = position_embedding_reference(x, pe)
    assert out.shape == (B, T, C), out.shape
    assert jnp.allclose(out, ref, atol=1e-6, rtol=1e-6), "mismatch vs reference"

    print("KERNEL_OK")
</pallas_src>

<mosaic_0001>
module attributes {stable_mosaic.version = 11 : i64} {
  func.func @pos_embed_kernel(%arg0: i32, %arg1: i32, %arg2: i32, %arg3: memref<2x8x32xf32, #tpu.memory_space<vmem>>, %arg4: memref<8x32xf32, #tpu.memory_space<vmem>>, %arg5: memref<2x8x32xf32, #tpu.memory_space<vmem>>) attributes {dimension_semantics = [#tpu.dimension_semantics<parallel>, #tpu.dimension_semantics<parallel>, #tpu.dimension_semantics<parallel>], iteration_bounds = array<i64: 1, 1, 1>, scalar_prefetch = 0 : i64, scratch_operands = 0 : i64, tpu.core_type = #tpu.core_type<tc>, window_params = [{transform_indices = @transform_0, window_bounds = array<i64: 2, 8, 32>}, {transform_indices = @transform_1, window_bounds = array<i64: 8, 32>}, {transform_indices = @transform_2, window_bounds = array<i64: 2, 8, 32>}]} {
    %c0 = arith.constant 0 : index
    %c0_0 = arith.constant 0 : index
    %0 = vector.load %arg4[%c0, %c0_0] : memref<8x32xf32, #tpu.memory_space<vmem>>, vector<8x32xf32>
    %c0_1 = arith.constant 0 : index
    %c0_2 = arith.constant 0 : index
    %c0_3 = arith.constant 0 : index
    %1 = vector.load %arg3[%c0_1, %c0_2, %c0_3] : memref<2x8x32xf32, #tpu.memory_space<vmem>>, vector<2x8x32xf32>
    %2 = vector.shape_cast %0 : vector<8x32xf32> to vector<1x8x32xf32>
    %3 = vector.broadcast %2 : vector<1x8x32xf32> to vector<2x8x32xf32>
    %4 = arith.addf %1, %3 : vector<2x8x32xf32>
    %c0_4 = arith.constant 0 : index
    %c0_5 = arith.constant 0 : index
    %c0_6 = arith.constant 0 : index
    %5 = vector.load %arg5[%c0_4, %c0_5, %c0_6] : memref<2x8x32xf32, #tpu.memory_space<vmem>>, vector<2x8x32xf32>
    tpu.vector_store %arg5[%c0_4, %c0_5, %c0_6], %4 {strides = array<i32>} : memref<2x8x32xf32, #tpu.memory_space<vmem>>, vector<2x8x32xf32>,
    return
  }
  func.func @transform_0(%arg0: i32, %arg1: i32, %arg2: i32) -> (i32, i32, i32) {
    %c0_i32 = arith.constant 0 : i32
    return %arg0, %arg1, %arg2 : i32, i32, i32
  }
  func.func @transform_1(%arg0: i32, %arg1: i32, %arg2: i32) -> (i32, i32) {
    %c0_i32 = arith.constant 0 : i32
    return %arg1, %arg2 : i32, i32
  }
  func.func @transform_2(%arg0: i32, %arg1: i32, %arg2: i32) -> (i32, i32, i32) {
    %c0_i32 = arith.constant 0 : i32
    return %arg0, %arg1, %arg2 : i32, i32, i32
  }
}

</mosaic_0001>

<bundles_post_ra>
// kernel: tpu_custom_call.1
= control target key start
LH: loop header
LB: loop body
LE: loop exit
PB: predicated region body
PF: predicated region fallthrough
CT: control target
= control target key end

     0   :  { %7 = vsyncpa [#allocation3], 0  ;;  %s203_s0 = inlined_call_operand.hbm [shape: f32[2,8,32], index: 0, kind: input, shape index: {}]   ;;  %s204_s1 = inlined_call_operand.hbm [shape: f32[8,32], index: 1, kind: input, shape index: {}]   ;;  %s205_s2 = inlined_call_operand.hbm [shape: f32[2,8,32], index: 2, kind: output, shape index: {}]  }
   0x1   :  { %8 = vsyncpa [#allocation6], 0 }
   0x2   :  { %9 = vsyncpa [#allocation4], 0  ;;  %s141_s9 = smov [#allocation2]   ;;  %s69_s13 = scalar_lea.hbm %s203_s0, 256 }
   0x3   :  { %s15_s10 = sshll.u32 %s141_s9, 4  ;;  %p70_p0 = scmp.ne.s32.totalorder %s203_s0, %s69_s13  ;;  %s16_s10 = int_to_ptr.vmem [resolvable:$true] %s15_s10 }
   0x4   :  { %p73_p1 = scmp.lt.u32.totalorder %s69_s13, %s203_s0 }
   0x6   :  { %p75_p2 = pnand %p73_p1, %p70_p0 }
   0x8   :  { %78 = shalt.err (!%p75_p2)
}
   0x9   :  { %s79_s18 = scalar_lea.vmem %s16_s10, 256  ;;  %p84_p4 = scmp.lt.s32.totalorder %s16_s10, %s16_s10 }
   0xa   :  { %p80_p3 = scmp.ne.s32.totalorder %s16_s10, %s79_s18  ;;  %p85_p5 = scmp.lt.s32.totalorder %s79_s18, %s79_s18 }
   0xc   :  { %p86_p6 = por %p85_p5, %p84_p4 }
   0xe   :  { %p87_p7 = pnand %p86_p6, %p80_p3 }
  0x10   :  { %90 = shalt.err (!%p87_p7)
}
  0x11   :  { %s142_s19 = smov 128   ;;  %s143_s20 = smov 8  }
  0x12   :  { %21 = dma.hbm_to_vmem [thread:$0]  %s203_s0, 256, %s16_s10, [#allocation3], %s142_s19, %s142_s19, %s143_s20  }
  0x13   :  { %s144_s23 = smov [#allocation5]   ;;  %s91_s27 = scalar_lea.hbm %s204_s1, 128 }
  0x14   :  { %s28_s24 = sshll.u32 %s144_s23, 4  ;;  %p92_p8 = scmp.ne.s32.totalorder %s204_s1, %s91_s27  ;;  %s29_s24 = int_to_ptr.vmem [resolvable:$true] %s28_s24 }
  0x15   :  { %p95_p9 = scmp.lt.u32.totalorder %s91_s27, %s204_s1 }
  0x17   :  { %p97_p10 = pnand %p95_p9, %p92_p8 }
  0x19   :  { %100 = shalt.err (!%p97_p10)
}
  0x1a   :  { %s101_s4 = scalar_lea.vmem %s29_s24, 128  ;;  %p106_p12 = scmp.lt.s32.totalorder %s29_s24, %s29_s24 }
  0x1b   :  { %p102_p11 = scmp.ne.s32.totalorder %s29_s24, %s101_s4  ;;  %p107_p13 = scmp.lt.s32.totalorder %s101_s4, %s101_s4 }
  0x1d   :  { %p108_p0 = por %p107_p13, %p106_p12 }
  0x1f   :  { %p109_p1 = pnand %p108_p0, %p102_p11 }
  0x21   :  { %112 = shalt.err (!%p109_p1)
}
  0x22   :  { %31 = dma.hbm_to_vmem [thread:$0]  %s204_s1, 128, %s29_s24, [#allocation6]  }
  0x23   :  { %135 = dma.done.wait [#allocation3], 256  }
  0x24   :  { %136 = vsyncadd [#allocation3], 4294967040 }
  0x25   :  { %137 = dma.done.wait [#allocation6], 128  }
  0x26   :  { %138 = vsyncadd [#allocation6], 4294967168  ;;  %s145_s6 = smov [#allocation7]   ;;  %v38_v0 = vld [vmem:[#allocation5] sm:$0xff]  ;;  %v39_v1 = vld [vmem:[#allocation2] sm:$0xff]  ;;  %vm43_vm0 = vcmask 261120  }
  0x27   :  { %s51_s7 = sshll.u32 %s145_s6, 4  ;;  %v40_v2 = vld [vmem:[#allocation2 + $0x8] sm:$0xff]  ;;  %v41_v3 = vadd.f32 %v39_v1, %v38_v0  ;;  %s52_s7 = int_to_ptr.vmem [resolvable:$true] %s51_s7 }
  0x28   :  { %v42_v4 = vadd.f32 %v40_v2, %v38_v0  ;;  %s113_s8 = scalar_lea.vmem %s52_s7, 256  ;;  %p118_p3 = scmp.lt.s32.totalorder %s52_s7, %s52_s7 }
  0x29   :  { %44 = vst.msk [vmem:[#allocation7] sm:$0xff] %vm43_vm0, %v41_v3  ;;  %p114_p2 = scmp.ne.s32.totalorder %s52_s7, %s113_s8  ;;  %p119_p4 = scmp.lt.s32.totalorder %s113_s8, %s113_s8 }
  0x2a   :  { %45 = vst.msk [vmem:[#allocation7 + $0x8] sm:$0xff] %vm43_vm0, %v42_v4 }
  0x2b   :  { %p120_p5 = por %p119_p4, %p118_p3 }
  0x2d   :  { %p121_p6 = pnand %p120_p5, %p114_p2 }
  0x2f   :  { %124 = shalt.err (!%p121_p6)
}
  0x30   :  { %s125_s10 = scalar_lea.hbm %s205_s2, 256 }
  0x31   :  { %p126_p7 = scmp.ne.s32.totalorder %s205_s2, %s125_s10  ;;  %p129_p8 = scmp.lt.u32.totalorder %s125_s10, %s205_s2 }
  0x33   :  { %p131_p9 = pnand %p129_p8, %p126_p7 }
  0x35   :  { %134 = shalt.err (!%p131_p9)
}
  0x36   :  { %57 = dma.vmem_to_hbm [thread:$0]  %s52_s7, 256, %s205_s2, [#allocation4], %s142_s19, %s142_s19, %s143_s20  }
  0x37   :  { %139 = dma.done.wait [#allocation4], 256  }
  0x38   :  { %140 = vsyncadd [#allocation4], 4294967040 }
  0x39   :  { %61 = vsyncpa [#allocation3], 1 }
  0x3a   :  { %62 = vsyncpa [#allocation6], 1 }
  0x3b   :  { %63 = vsyncpa [#allocation4], 1 }

</bundles_post_ra>
